<compile_context>
chip_gen: v6e
topology: v6e:2x2x1
jax: 0.10.0
libtpu: 0.0.40
codegen_flags: <defaults>
</compile_context>

<pallas_src>
import functools

import jax
import jax.numpy as jnp
from jax import lax
from jax.experimental import pallas as pl
from jax.experimental.pallas import tpu as pltpu

MARGIN = 0.07
PAIRWISE_EPS = 1e-6  # matches torch.nn.functional.pairwise_distance default eps


def _ceil_div(a, b):
    return -(-a // b)


def _round_up(x, a):
    return _ceil_div(x, a) * a


def _round_down(x, a):
    return (x // a) * a


def contrastive_loss_kernel(o1_ref, o2_ref, label_ref, out_ref, *, margin, eps,
                            total_rows):
    tb, d = o1_ref.shape
    # Cast to f32 for the math (v5e has no bf16 VPU path); bf16-native DMA still
    # halves HBM traffic.
    o1 = o1_ref[...].astype(jnp.float32)
    o2 = o2_ref[...].astype(jnp.float32)
    label = label_ref[...]                                    # (tb, 1) f32

    diff = (o1 - o2) + eps                                    # (tb, D)  VPU
    sq = diff * diff                                          # (tb, D)  VPU

    # Lane reduction on the MXU (idle otherwise) instead of an XLU cross-lane sum.
    ones_col = jnp.ones((d, 1), jnp.float32)
    sq_norm = jnp.dot(sq, ones_col,
                      preferred_element_type=jnp.float32)     # (tb, 1)  MXU

    dist = jnp.sqrt(sq_norm)                                  # EUP slot, ~free
    hinge = jnp.maximum(margin - dist, 0.0)
    # label * dist^2 == label * sq_norm  (skip the redundant sqrt->square trip).
    loss = label * sq_norm + (1.0 - label) * (hinge * hinge)  # (tb, 1)

    # Mask padded rows of a partial last block (their VMEM contents are stale).
    row = pl.program_id(0) * tb + lax.broadcasted_iota(jnp.int32, (tb, 1), 0)
    loss = jnp.where(row < total_rows, loss, 0.0)

    # One lane-dense (8,128) store per tile carrying the tile's partial sum.
    out_ref[...] = jnp.full(out_ref.shape, jnp.sum(loss), out_ref.dtype)


def contrastive_loss(output1, output2, label, *, margin=MARGIN, tile_b=None,
                     features_bf16=False):
    """output1, output2: (B, D) float (f32 or bf16); label: (B,) or (B, 1) 0/1."""
    B, D = output1.shape

    if features_bf16 and output1.dtype == jnp.float32:
        # Optional: halve HBM traffic (perturbs the distance ~1e-3 relative).
        output1 = output1.astype(jnp.bfloat16)
        output2 = output2.astype(jnp.bfloat16)

    label2d = jnp.asarray(label).astype(jnp.float32).reshape(B, 1)

    itemsize = jnp.dtype(output1.dtype).itemsize
    # Packed-sublane alignment: 8 for f32, 16 for bf16, 32 for int8.
    align = max(8, 32 // itemsize)

    # Generation-aware VMEM budget (v7x: 64 MiB physical / keep <=48 MiB;
    # v5e/v6e: 128 MiB physical / can push higher).
    try:
        info = pltpu.get_tpu_info()
        phys_vmem = int(getattr(info, "vmem_capacity_bytes", 64 * 1024 * 1024))
    except Exception:  # be conservative if the query is unavailable
        phys_vmem = 64 * 1024 * 1024
    if phys_vmem <= 64 * 1024 * 1024:
        vmem_limit = 48 * 1024 * 1024
    else:
        vmem_limit = 80 * 1024 * 1024
    ws_target = (vmem_limit * 3) // 4  # headroom for Mosaic internal scratch

    # VMEM-resident bytes per batch row:
    #   features: 2 inputs x 2 pipeline buffers x D*itemsize
    #   label   : 2 buffers x 512 B  ((tile_b,1) f32 pads to a full 128-lane row)
    per_row_bytes = 4 * D * itemsize + 1024

    if tile_b is None:
        fit = max(align, ws_target // per_row_bytes)
        fit = min(fit, 32768)
        if fit >= B:
            # Whole batch fits one block.  Split in two if each half still gives
            # a >=512 KiB feature DMA per step (pipeline overlap, v7x dual-TC).
            half = _round_up(_ceil_div(B, 2), align)
            if half < B and half * D * itemsize >= 512 * 1024:
                tile_b = half
            else:
                tile_b = B
        else:
            tile_b = max(align, _round_down(fit, align))
    else:
        tile_b = B if tile_b >= B else max(align, _round_down(tile_b, align))

    num_tiles = _ceil_div(B, tile_b)
    grid = (num_tiles,)

    kernel = functools.partial(
        contrastive_loss_kernel,
        margin=float(margin),
        eps=PAIRWISE_EPS,
        total_rows=B,
    )

    partial = pl.pallas_call(
        kernel,
        out_shape=jax.ShapeDtypeStruct((num_tiles * 8, 128), jnp.float32),
        grid=grid,
        in_specs=[
            pl.BlockSpec((tile_b, D), lambda i: (i, 0)),
            pl.BlockSpec((tile_b, D), lambda i: (i, 0)),
            pl.BlockSpec((tile_b, 1), lambda i: (i, 0)),
        ],
        out_specs=pl.BlockSpec((8, 128), lambda i: (i, 0)),
        compiler_params=pltpu.CompilerParams(
            dimension_semantics=("parallel",),
            vmem_limit_bytes=int(vmem_limit),
        ),
    )(output1, output2, label2d)

    # Each tile's (8,128) block is filled with its partial sum; pick one per tile.
    per_tile = partial.reshape(num_tiles, 8, 128)[:, 0, 0]
    return jnp.sum(per_tile) / B


def contrastive_loss_ref(output1, output2, label, margin=MARGIN):
    # Pure-JAX reference mirroring the PyTorch forward (computed in f32).
    o1 = jnp.asarray(output1, jnp.float32)
    o2 = jnp.asarray(output2, jnp.float32)
    diff = (o1 - o2) + PAIRWISE_EPS
    dist = jnp.sqrt(jnp.sum(diff * diff, axis=-1))
    lbl = jnp.asarray(label, jnp.float32).reshape(dist.shape)
    return jnp.mean(lbl * dist**2 + (1.0 - lbl) * jnp.maximum(margin - dist, 0.0) ** 2)


if __name__ == "__main__":
    key = jax.random.PRNGKey(0)
    k1, k2, k3, k4, k5, k6 = jax.random.split(key, 6)

    # Case 1: f32 features, B not a multiple of 8, auto tile (single block).
    B, D = 20, 64
    o1 = jax.random.normal(k1, (B, D), dtype=jnp.float32) * 0.1
    o2 = jax.random.normal(k2, (B, D), dtype=jnp.float32) * 0.1
    lbl = (jax.random.uniform(k3, (B,)) < 0.5).astype(jnp.float32)

    loss1 = jax.block_until_ready(contrastive_loss(o1, o2, lbl))
    ref1 = contrastive_loss_ref(o1, o2, lbl)
    assert jnp.allclose(loss1, ref1, rtol=1e-5, atol=1e-6), (loss1, ref1)

    # Case 2: same data, forced small tile -> 3-step grid with a partial last
    # block (exercises the in-kernel row mask of the partial-sum path).
    loss2 = jax.block_until_ready(contrastive_loss(o1, o2, lbl, tile_b=8))
    assert jnp.allclose(loss2, ref1, rtol=1e-5, atol=1e-6), (loss2, ref1)

    # Case 3: bf16 features DMA'd as bf16 (half the HBM traffic), f32 math
    # inside; forced 16-row tiles (bf16 packed-sublane alignment), 3 tiles.
    Bb, Db = 48, 128
    o1b = (jax.random.normal(k4, (Bb, Db), dtype=jnp.float32) * 0.1).astype(jnp.bfloat16)
    o2b = (jax.random.normal(k5, (Bb, Db), dtype=jnp.float32) * 0.1).astype(jnp.bfloat16)
    lblb = (jax.random.uniform(k6, (Bb,)) < 0.5).astype(jnp.float32)

    loss3 = jax.block_until_ready(contrastive_loss(o1b, o2b, lblb, tile_b=16))
    ref3 = contrastive_loss_ref(o1b, o2b, lblb)
    assert jnp.allclose(loss3, ref3, rtol=1e-5, atol=1e-6), (loss3, ref3)

    # Case 4: opt-in wrapper-side bf16 cast of f32 features (bandwidth mode);
    # loose tolerance since this intentionally perturbs the distance.
    loss4 = jax.block_until_ready(contrastive_loss(o1, o2, lbl, features_bf16=True))
    assert jnp.allclose(loss4, ref1, rtol=5e-2, atol=1e-4), (loss4, ref1)

    print("KERNEL_OK")
</pallas_src>

<mosaic_0001>
module attributes {stable_mosaic.version = 11 : i64} {
  func.func @contrastive_loss_kernel(%arg0: i32, %arg1: memref<20x64xf32, #tpu.memory_space<vmem>>, %arg2: memref<20x64xf32, #tpu.memory_space<vmem>>, %arg3: memref<20x1xf32, #tpu.memory_space<vmem>>, %arg4: memref<8x128xf32, #tpu.memory_space<vmem>>) attributes {dimension_semantics = [#tpu.dimension_semantics<parallel>], iteration_bounds = array<i64: 1>, scalar_prefetch = 0 : i64, scratch_operands = 0 : i64, tpu.core_type = #tpu.core_type<tc>, window_params = [{transform_indices = @transform_0, window_bounds = array<i64: 20, 64>}, {transform_indices = @transform_1, window_bounds = array<i64: 20, 64>}, {transform_indices = @transform_2, window_bounds = array<i64: 20, 1>}, {transform_indices = @transform_3, window_bounds = array<i64: 8, 128>}]} {
    %c0 = arith.constant 0 : index
    %c0_0 = arith.constant 0 : index
    %0 = vector.load %arg1[%c0, %c0_0] : memref<20x64xf32, #tpu.memory_space<vmem>>, vector<20x64xf32>
    %c0_1 = arith.constant 0 : index
    %c0_2 = arith.constant 0 : index
    %1 = vector.load %arg2[%c0_1, %c0_2] : memref<20x64xf32, #tpu.memory_space<vmem>>, vector<20x64xf32>
    %c0_3 = arith.constant 0 : index
    %c0_4 = arith.constant 0 : index
    %2 = vector.load %arg3[%c0_3, %c0_4] : memref<20x1xf32, #tpu.memory_space<vmem>>, vector<20x1xf32>
    %3 = arith.subf %0, %1 : vector<20x64xf32>
    %cst = arith.constant 9.99999997E-7 : f32
    %4 = vector.broadcast %cst : f32 to vector<20x64xf32>
    %5 = arith.addf %3, %4 : vector<20x64xf32>
    %6 = arith.mulf %5, %5 : vector<20x64xf32>
    %cst_5 = arith.constant 1.000000e+00 : f32
    %7 = vector.broadcast %cst_5 : f32 to vector<64x1xf32>
    %cst_6 = arith.constant dense<0.000000e+00> : vector<20x1xf32>
    %8 = tpu.matmul %6, %7, %cst_6 {dimension_numbers = #tpu.dot_dimension_numbers<[1], [0], [0], [1], [0, 0, 1, 1], [], []>} : vector<20x64xf32>, vector<64x1xf32>, vector<20x1xf32> -> vector<20x1xf32>
    %9 = math.sqrt %8 : vector<20x1xf32>
    %cst_7 = arith.constant 7.000000e-02 : f32
    %10 = vector.broadcast %cst_7 : f32 to vector<20x1xf32>
    %11 = arith.subf %10, %9 : vector<20x1xf32>
    %cst_8 = arith.constant 0.000000e+00 : f32
    %12 = vector.broadcast %cst_8 : f32 to vector<20x1xf32>
    %13 = arith.maximumf %11, %12 : vector<20x1xf32>
    %14 = arith.mulf %2, %8 : vector<20x1xf32>
    %cst_9 = arith.constant 1.000000e+00 : f32
    %15 = vector.broadcast %cst_9 : f32 to vector<20x1xf32>
    %16 = arith.subf %15, %2 : vector<20x1xf32>
    %17 = arith.mulf %13, %13 : vector<20x1xf32>
    %18 = arith.mulf %16, %17 : vector<20x1xf32>
    %19 = arith.addf %14, %18 : vector<20x1xf32>
    %c20_i32 = arith.constant 20 : i32
    %20 = arith.muli %arg0, %c20_i32 : i32
    %21 = tpu.iota {dimensions = array<i32: 0>} : vector<20x1xi32>
    %22 = vector.broadcast %20 : i32 to vector<20x1xi32>
    %23 = arith.addi %22, %21 : vector<20x1xi32>
    %c20_i32_10 = arith.constant 20 : i32
    %24 = vector.broadcast %c20_i32_10 : i32 to vector<20x1xi32>
    %25 = arith.cmpi slt, %23, %24 : vector<20x1xi32>
    %cst_11 = arith.constant 0.000000e+00 : f32
    %26 = vector.broadcast %cst_11 : f32 to vector<20x1xf32>
    %27 = arith.select %25, %19, %26 : vector<20x1xi1>, vector<20x1xf32>
    %28 = vector.shape_cast %27 : vector<20x1xf32> to vector<1x20x1xf32>
    %cst_12 = arith.constant dense<0.000000e+00> : vector<1xf32>
    %29 = vector.multi_reduction <add>, %28, %cst_12 [1, 2] : vector<1x20x1xf32> to vector<1xf32>
    %30 = vector.shape_cast %29 : vector<1xf32> to vector<1x1x1xf32>
    %31 = vector.extract %30[0, 0, 0] : f32 from vector<1x1x1xf32>
    %32 = vector.broadcast %31 : f32 to vector<8x128xf32>
    %c0_13 = arith.constant 0 : index
    %c0_14 = arith.constant 0 : index
    %33 = vector.load %arg4[%c0_13, %c0_14] : memref<8x128xf32, #tpu.memory_space<vmem>>, vector<8x128xf32>
    tpu.vector_store %arg4[%c0_13, %c0_14], %32 {strides = array<i32>} : memref<8x128xf32, #tpu.memory_space<vmem>>, vector<8x128xf32>,
    return
  }
  func.func @transform_0(%arg0: i32) -> (i32, i32) {
    %c0_i32 = arith.constant 0 : i32
    %c0_i32_0 = arith.constant 0 : i32
    return %arg0, %c0_i32 : i32, i32
  }
  func.func @transform_1(%arg0: i32) -> (i32, i32) {
    %c0_i32 = arith.constant 0 : i32
    %c0_i32_0 = arith.constant 0 : i32
    return %arg0, %c0_i32 : i32, i32
  }
  func.func @transform_2(%arg0: i32) -> (i32, i32) {
    %c0_i32 = arith.constant 0 : i32
    %c0_i32_0 = arith.constant 0 : i32
    return %arg0, %c0_i32 : i32, i32
  }
  func.func @transform_3(%arg0: i32) -> (i32, i32) {
    %c0_i32 = arith.constant 0 : i32
    %c0_i32_0 = arith.constant 0 : i32
    return %arg0, %c0_i32 : i32, i32
  }
}

</mosaic_0001>

<bundles_post_ra>
// kernel: tpu_custom_call.1
= control target key start
LH: loop header
LB: loop body
LE: loop exit
PB: predicated region body
PF: predicated region fallthrough
CT: control target
= control target key end

     0   :  { %8 = vsyncpa [#allocation3], 0  ;;  %s392_s0 = inlined_call_operand.vmem [shape: f32[20,64], index: 0, kind: input, shape index: {}]   ;;  %s393_s1 = inlined_call_operand.hbm [shape: f32[20,64], index: 1, kind: input, shape index: {}]   ;;  %s394_s2 = inlined_call_operand.vmem [shape: f32[20,1], index: 2, kind: input, shape index: {}]   ;;  %s395_s3 = inlined_call_operand.hbm [shape: f32[8,128], index: 3, kind: output, shape index: {}]  }
   0x1   :  { %9 = vsyncpa [#allocation4], 0  ;;  %s341_s12 = smov [#allocation2]  }
   0x2   :  { %s17_s13 = sshll.u32 %s341_s12, 4  ;;  %s18_s13 = int_to_ptr.vmem [resolvable:$true] %s17_s13 }
   0x3   :  { %s305_s14 = scalar_lea.vmem %s18_s13, 384  ;;  %p310_p1 = scmp.lt.s32.totalorder %s18_s13, %s18_s13 }
   0x4   :  { %p306_p0 = scmp.ne.s32.totalorder %s18_s13, %s305_s14  ;;  %p311_p2 = scmp.lt.s32.totalorder %s305_s14, %s305_s14 }
   0x6   :  { %p312_p3 = por %p311_p2, %p310_p1 }
   0x8   :  { %p313_p4 = pnand %p312_p3, %p306_p0 }
   0xa   :  { %316 = shalt.err (!%p313_p4)
}
   0xb   :  { %s342_s15 = smov 128   ;;  %s343_s16 = smov 8  }
   0xc   :  { %23 = dma.hbm_to_vmem [thread:$0]  %s393_s1, 384, %s18_s13, [#allocation3], %s342_s15, %s342_s15, %s343_s16  }
   0xd   :  { %337 = dma.done.wait [#allocation3], 384  }
   0xe   :  { %338 = vsyncadd [#allocation3], 4294966912  ;;  %v344_v0 = vmov 0.0   ;;  %v345_v1 = vmov 1.0   ;;  %v29_v2 = vld [vmem:[%s392_s0] sm:$0xff]  ;;  %v30_v4 = vld [vmem:[%s392_s0 + $0x8] sm:$0xff]  ;;  %v180_v33 = vlaneseq }
   0xf   :  { %241 = vmatprep.subr.mxu0 %v344_v0  ;;  %266 = vmatprep.subr.mxu1 %v344_v0  ;;  %v32_v3 = vld [vmem:[#allocation2] sm:$0xff]  ;;  %v33_v6 = vld [vmem:[#allocation2 + $0x8] sm:$0xff]  ;;  %v31_v7 = vld [vmem:[%s392_s0 + $0x10] sm:$0xf]  ;;  %vm47_vm0 = vcmask 523264   ;;  %vm346_vm1 = vmmov 0  }
  0x10   :  { %242 = vmatpush3.msra.mxu0 %v345_v1  ;;  %274 = vmatpush3.msra.mxu1 %v345_v1  ;;  %v38_v5 = vsub.f32 %v29_v2, %v32_v3  ;;  %v34_v8 = vld [vmem:[#allocation2 + $0x10] sm:$0xf]  ;;  %v39_v9 = vsub.f32 %v30_v4, %v33_v6  ;;  %v35_v37 = vld [vmem:[%s394_s2] sm:$0xff]  ;;  %v36_v40 = vld [vmem:[%s394_s2 + $0x8] sm:$0xff]  ;;  %v181_v47 = vshrl.u32 %v180_v33, 7  ;;  %vm194_vm8 = vcmask 7168  }
  0x11   :  { %243 = vmatprep.subr.mxu0 %v344_v0  ;;  %267 = vmatprep.subr.mxu1 %v344_v0  ;;  %v40_v11 = vsub.f32 %v31_v7, %v34_v8  ;;  %v167_v43 = vsub.f32 1.0, %v35_v37  ;;  %v168_v46 = vsub.f32 1.0, %v36_v40  ;;  %v37_v50 = vld [vmem:[%s394_s2 + $0x10] sm:$0xf]  ;;  %vm198_vm10 = vcmask 3072   ;;  %s347_s2 = smov [#allocation5]  }
  0x12   :  { %244 = vmatpush3.msra.mxu0 %v345_v1  ;;  %275 = vmatpush3.msra.mxu1 %v345_v1  ;;  %v41_v10 = vadd.f32 1e-06, %v38_v5  ;;  %v42_v12 = vadd.f32 1e-06, %v39_v9  ;;  %v169_v54 = vsub.f32 1.0, %v37_v50  ;;  %v183_v58 = vadd.s32 16, %v181_v47 }
  0x13   :  { %245 = vmatprep.subr.mxu0 %v344_v0  ;;  %268 = vmatprep.subr.mxu1 %v344_v0  ;;  %v43_v15 = vadd.f32 1e-06, %v40_v11  ;;  %s218_s29 = sshll.u32 %s347_s2, 4  ;;  %s219_s29 = int_to_ptr.vmem [resolvable:$true] %s218_s29 }
  0x14   :  { %246 = vmatpush3.msra.mxu0 %v345_v1  ;;  %276 = vmatpush3.msra.mxu1 %v345_v1  ;;  %v44_v13 = vmul.f32 %v41_v10, %v41_v10  ;;  %v45_v14 = vmul.f32 %v42_v12, %v42_v12  ;;  %vm190_vm9 = vcmp.lt.s32.totalorder %v183_v58, 20  ;;  %s317_s4 = scalar_lea.vmem %s219_s29, 128  ;;  %p322_p6 = scmp.lt.s32.totalorder %s219_s29, %s219_s29 }
  0x15   :  { %247 = vmatprep.subr.mxu0 %v344_v0  ;;  %269 = vmatprep.subr.mxu1 %v344_v0  ;;  %v46_v16 = vmul.f32 %v43_v15, %v43_v15  ;;  %p318_p5 = scmp.ne.s32.totalorder %s219_s29, %s317_s4  ;;  %p323_p7 = scmp.lt.s32.totalorder %s317_s4, %s317_s4 }
  0x16   :  { %248 = vmatpush3.msra.mxu0 %v345_v1  ;;  %277 = vmatpush3.msra.mxu1 %v345_v1 }
  0x17   :  { %249 = vmatprep.subr.mxu0 %v344_v0  ;;  %270 = vmatprep.subr.mxu1 %v344_v0  ;;  %p324_p8 = por %p323_p7, %p322_p6 }
  0x18   :  { %250 = vmatpush3.msra.mxu0 %v345_v1  ;;  %278 = vmatpush3.msra.mxu1 %v345_v1 }
  0x19   :  { %251 = vmatprep.subr.mxu0 %v344_v0  ;;  %271 = vmatprep.subr.mxu1 %v344_v0  ;;  %p325_p9 = pnand %p324_p8, %p318_p5 }
  0x1a   :  { %252 = vmatpush3.msra.mxu0 %v345_v1  ;;  %279 = vmatpush3.msra.mxu1 %v345_v1 }
  0x1b   :  { %253 = vmatprep.subr.mxu0 %v344_v0  ;;  %272 = vmatprep.subr.mxu1 %v344_v0 }
  0x1c   :  { %254 = vmatpush3.msra.mxu0 %v345_v1  ;;  %280 = vmatpush3.msra.mxu1 %v345_v1 }
  0x1d   :  { %255 = vmatprep.subr.mxu0 %v344_v0  ;;  %273 = vmatprep.subr.mxu1 %v344_v0 }
  0x1e   :  { %256 = vmatpush3.msra.mxu0 %v345_v1  ;;  %281 = vmatpush3.msra.mxu1 %v345_v1 }
  0x1f   :  { %257 = vmatprep.mubr.msk.f32.mxu0 %vm346_vm1, %v344_v0  ;;  %260 = vmatprep.mubr.msk.f32.mxu1 %vm346_vm1, %v344_v0 }
  0x20   :  { %258 = vmatmul.mubr.msk.f32.vlgmr.msra.gmra.mxu0 %vm47_vm0, %v44_v13  ;;  %261 = vmatmul.mubr.msk.f32.vlgmr.msra.gmra.mxu1 %vm47_vm0, %v45_v14 }
  0x21   :  { %263 = vmatprep.mubr.msk.f32.mxu1 %vm346_vm1, %v344_v0 }
  0x24   :  { %264 = vmatmul.mubr.msk.f32.gmra.mxu1 %vm47_vm0, %v46_v16 }
  0xe0   :  { %v123_v17 = vpop.f32.mrf.mxu0  ;;  %v128_v18 = vpop.f32.mrf.mxu1 }
  0xe1   :  { %291 = vrsqrt.f32 %v123_v17  ;;  %vm139_vm2 = vcmp.eq.f32.partialorder %v123_v17, inf  ;;  %v142_v27 = vand.u32 2147483648, %v123_v17  ;;  %vm141_vm3 = vcmp.eq.f32.partialorder %v123_v17, 0.0 }
  0xe2   :  { %293 = vrsqrt.f32 %v128_v18  ;;  %v262_v19 = vpop.f32.mrf.mxu1  ;;  %v259_v20 = vpop.f32.mrf.mxu0  ;;  %vm146_vm4 = vcmp.eq.f32.partialorder %v128_v18, inf  ;;  %v149_v29 = vand.u32 2147483648, %v128_v18  ;;  %vm148_vm5 = vcmp.eq.f32.partialorder %v128_v18, 0.0 }
  0xe3   :  { %v164_v53 = vmul.f32 %v123_v17, %v35_v37  ;;  %v165_v56 = vmul.f32 %v128_v18, %v36_v40 }
  0xe4   :  { %v133_v21 = vpop.f32.mrf.mxu1 }
  0xe5   :  { %295 = vrsqrt.f32 %v133_v21  ;;  %vm153_vm6 = vcmp.eq.f32.partialorder %v133_v21, inf  ;;  %v156_v38 = vand.u32 2147483648, %v133_v21  ;;  %vm155_vm7 = vcmp.eq.f32.partialorder %v133_v21, 0.0 }
  0xe6   :  { %v265_v22 = vpop.f32.mrf.mxu1  ;;  %v166_v62 = vmul.f32 %v133_v21, %v37_v50 }
  0xee   :  { %v292_v23 = vpop.eup %291 }
  0xef   :  { %v294_v24 = vpop.eup %293  ;;  %v138_v25 = vmul.f32 %v292_v23, %v123_v17 }
  0xf0   :  { %v145_v26 = vmul.f32 %v294_v24, %v128_v18 }
  0xf1   :  { %v140_v28 = vsel %vm139_vm2, %v123_v17, %v138_v25 }
  0xf2   :  { %v296_v30 = vpop.eup %295  ;;  %v143_v31 = vsel %vm141_vm3, %v142_v27, %v140_v28  ;;  %v147_v32 = vsel %vm146_vm4, %v128_v18, %v145_v26 }
  0xf3   :  { %v152_v34 = vmul.f32 %v296_v30, %v133_v21  ;;  %v150_v35 = vsel %vm148_vm5, %v149_v29, %v147_v32  ;;  %v158_v36 = vsub.f32 0.07, %v143_v31 }
  0xf4   :  { %v159_v39 = vsub.f32 0.07, %v150_v35 }
  0xf5   :  { %v154_v41 = vsel %vm153_vm6, %v133_v21, %v152_v34  ;;  %v161_v42 = vmax.f32 %v158_v36, 0.0 }
  0xf6   :  { %v157_v44 = vsel %vm155_vm7, %v156_v38, %v154_v41  ;;  %v162_v45 = vmax.f32 %v159_v39, 0.0 }
  0xf7   :  { %v160_v48 = vsub.f32 0.07, %v157_v44  ;;  %v170_v49 = vmul.f32 %v161_v42, %v161_v42 }
  0xf8   :  { %v171_v51 = vmul.f32 %v162_v45, %v162_v45 }
  0xf9   :  { %v163_v52 = vmax.f32 %v160_v48, 0.0  ;;  %v173_v55 = vmul.f32 %v170_v49, %v167_v43 }
  0xfa   :  { %v174_v57 = vmul.f32 %v171_v51, %v168_v46 }
  0xfb   :  { %v172_v59 = vmul.f32 %v163_v52, %v163_v52  ;;  %v176_v60 = vadd.f32 %v173_v55, %v164_v53 }
  0xfc   :  { %v177_v61 = vadd.f32 %v174_v57, %v165_v56 }
  0xfd   :  { %v175_v63 = vmul.f32 %v172_v59, %v169_v54  ;;  %v195_v0 = vsel %vm194_vm8, %v176_v60, 0.0 }
  0xfe   :  { %v196_v1 = vsel %vm194_vm8, %v177_v61, 0.0 }
  0xff   :  { %v178_v2 = vadd.f32 %v175_v63, %v166_v62  ;;  %v197_v4 = vadd.f32 %v196_v1, %v195_v0 }
 0x101   :  { %v193_v3 = vsel %vm190_vm9, %v178_v2, 0.0 }
 0x102   :  { %v199_v5 = vsel %vm198_vm10, %v193_v3, 0.0 }
 0x103   :  { %v200_v6 = vadd.f32 %v199_v5, %v197_v4 }
 0x105   :  { %201 = vadd.xlane.f32.xlu0 %v200_v6 }
 0x18e   :  { %v202_v7 = vpop.xlane.xlu0 %201 }
 0x18f   :  { %v203_v8 = vrot.slane %v202_v7, 4 }
 0x191   :  { %v204_v9 = vadd.f32 %v203_v8, %v202_v7 }
 0x193   :  { %v205_v10 = vrot.slane %v204_v9, 2 }
 0x195   :  { %v206_v11 = vadd.f32 %v205_v10, %v204_v9 }
 0x197   :  { %v207_v12 = vrot.slane %v206_v11, 1 }
 0x199   :  { %v208_v13 = vadd.f32 %v207_v12, %v206_v11 }
 0x19b   :  { %282 = vpush %v208_v13 }
 0x1cc   :  { %s283_s30 = spop %282 }
 0x1cd   :  { %v210_v14 = vstv %s283_s30 }
 0x1ce   :  { %211 = vst [vmem:[#allocation5] sm:$0xff] %v210_v14 }
 0x1cf   :  { %328 = shalt.err (!%p325_p9)
}
 0x1d0   :  { %221 = dma.vmem_to_hbm [thread:$0]  %s219_s29, 128, %s395_s3, [#allocation4]  }
 0x1d1   :  { %339 = dma.done.wait [#allocation4], 128  }
 0x1d2   :  { %340 = vsyncadd [#allocation4], 4294967168 }
 0x1d3   :  { %225 = vsyncpa [#allocation3], 1 }
 0x1d4   :  { %226 = vsyncpa [#allocation4], 1 }

</bundles_post_ra>
